<compile_context>
chip_gen: v5e
topology: v5e:2x2
jax: 0.10.0
libtpu: 0.0.40
codegen_flags: <defaults>
</compile_context>

<pallas_src>
import functools

import jax
import jax.numpy as jnp
import numpy as np
from jax.experimental import pallas as pl
from jax.experimental.pallas import tpu as pltpu

_LANES = 128
_SUBLANES = 8


def _mse_kernel(u_ref, t_ref, out_ref, *, inv_n):
    """Plain MSE over a lane-dense (rows, 128) slab; zero padding cancels."""
    d = u_ref[...] - t_ref[...]
    out_ref[...] = jnp.sum(d * d, keepdims=True) * inv_n


def _mse_classify_kernel(u_ref, tgt_ref, out_ref, *, alpha, num_class, inv_n):
    """Fused LabelSmoothing(one_hot(target)) + MSE in one grid step."""
    u = u_ref[...]                                       # (B, C) f32 predictions
    t = tgt_ref[...]                                     # (B, 1) int32 labels
    col = jax.lax.broadcasted_iota(jnp.int32, u.shape, 1)
    onehot = (col == t).astype(jnp.float32)              # (B, C)
    smoothed = (1.0 - alpha) * onehot + (alpha / num_class)
    d = u - smoothed
    out_ref[...] = jnp.sum(d * d, keepdims=True) * inv_n


def mse_on_mean(outputs, target, *, num_class=10, alpha=0.0, is_classify=False):
    # MSEOnMean.forward: tuple outputs -> take the mean component u.
    u = outputs[0] if isinstance(outputs, (tuple, list)) else outputs
    u = u.astype(jnp.float32)

    if is_classify:
        B, C = u.shape
        assert C == num_class
        tgt = target.astype(jnp.int32).reshape(B, 1)
        kernel = functools.partial(
            _mse_classify_kernel,
            alpha=float(alpha), num_class=float(num_class), inv_n=1.0 / (B * C))
        out = pl.pallas_call(
            kernel,
            out_shape=jax.ShapeDtypeStruct((1, 1), jnp.float32),
            grid_spec=pltpu.PrefetchScalarGridSpec(
                num_scalar_prefetch=0,
                grid=(1,),                                 # whole batch, one step
                in_specs=[pl.BlockSpec((B, C), lambda i: (0, 0)),
                          pl.BlockSpec((B, 1), lambda i: (0, 0))],
                out_specs=pl.BlockSpec((1, 1), lambda i: (0, 0)),
            ),
            compiler_params=pltpu.CompilerParams(
                dimension_semantics=("arbitrary",)),
        )(u, tgt)
        return out[0, 0]

    # Regression path (module default): target is a dense float tensor of the
    # same shape as u. Flatten both operands into a lane-dense (rows, 128)
    # slab; zero padding contributes 0 to sum((u - t)^2), and we divide by the
    # true element count.
    t = target.astype(jnp.float32)
    n = u.size
    pad = (-n) % (_SUBLANES * _LANES)
    u_flat = jnp.pad(u.reshape(-1), (0, pad)).reshape(-1, _LANES)
    t_flat = jnp.pad(t.reshape(-1), (0, pad)).reshape(-1, _LANES)
    rows = u_flat.shape[0]

    kernel = functools.partial(_mse_kernel, inv_n=1.0 / n)
    out = pl.pallas_call(
        kernel,
        out_shape=jax.ShapeDtypeStruct((1, 1), jnp.float32),
        grid_spec=pltpu.PrefetchScalarGridSpec(
            num_scalar_prefetch=0,
            grid=(1,),                                     # whole problem, one step
            in_specs=[pl.BlockSpec((rows, _LANES), lambda i: (0, 0)),
                      pl.BlockSpec((rows, _LANES), lambda i: (0, 0))],
            out_specs=pl.BlockSpec((1, 1), lambda i: (0, 0)),
        ),
        compiler_params=pltpu.CompilerParams(
            dimension_semantics=("arbitrary",)),
    )(u_flat, t_flat)
    return out[0, 0]


def reference_mse_on_mean(outputs, target, *, num_class=10, alpha=0.0,
                          is_classify=False):
    """Pure-JAX reference mirroring the PyTorch forward."""
    u = outputs[0] if isinstance(outputs, (tuple, list)) else outputs
    if is_classify:
        t = ((1.0 - alpha) * jax.nn.one_hot(target, num_class, dtype=jnp.float32)
             + alpha / num_class)
    else:
        t = target
    return jnp.mean((u.astype(jnp.float32) - t.astype(jnp.float32)) ** 2)


if __name__ == "__main__":
    key = jax.random.PRNGKey(0)
    B, C = 8, 10                                   # batch, num_class (small)
    k1, k2, k3, k4 = jax.random.split(key, 4)

    u = jax.random.normal(k1, (B, C), dtype=jnp.float32)
    cov = jax.random.normal(k2, (B, C, C), dtype=jnp.float32)   # ignored by the loss
    target_dense = jax.random.normal(k3, (B, C), dtype=jnp.float32)
    labels = jax.random.randint(k4, (B,), 0, C, dtype=jnp.int32)

    # 1) module default: is_classify=False, outputs passed as a (u, cov) tuple.
    loss_reg = jax.block_until_ready(mse_on_mean((u, cov), target_dense))
    ref_reg = reference_mse_on_mean((u, cov), target_dense)
    assert np.allclose(np.asarray(loss_reg), np.asarray(ref_reg),
                       rtol=1e-5, atol=1e-6), (loss_reg, ref_reg)

    # 2) is_classify=True with label smoothing fused in-kernel.
    loss_cls = jax.block_until_ready(
        mse_on_mean(u, labels, num_class=C, alpha=0.1, is_classify=True))
    ref_cls = reference_mse_on_mean(u, labels, num_class=C, alpha=0.1,
                                    is_classify=True)
    assert np.allclose(np.asarray(loss_cls), np.asarray(ref_cls),
                       rtol=1e-5, atol=1e-6), (loss_cls, ref_cls)

    print("KERNEL_OK")
</pallas_src>

<mosaic_0001>
module attributes {stable_mosaic.version = 11 : i64} {
  func.func @_mse_kernel(%arg0: i32, %arg1: memref<8x128xf32, #tpu.memory_space<vmem>>, %arg2: memref<8x128xf32, #tpu.memory_space<vmem>>, %arg3: memref<1x1xf32, #tpu.memory_space<vmem>>) attributes {dimension_semantics = [#tpu.dimension_semantics<arbitrary>], iteration_bounds = array<i64: 1>, scalar_prefetch = 0 : i64, scratch_operands = 0 : i64, tpu.core_type = #tpu.core_type<tc>, window_params = [{pipeline_mode = #tpu.pipeline_mode<synchronous>, transform_indices = @transform_0, window_bounds = array<i64: 8, 128>}, {pipeline_mode = #tpu.pipeline_mode<synchronous>, transform_indices = @transform_1, window_bounds = array<i64: 8, 128>}, {pipeline_mode = #tpu.pipeline_mode<synchronous>, transform_indices = @transform_2, window_bounds = array<i64: 1, 1>}]} {
    %c0 = arith.constant 0 : index
    %c0_0 = arith.constant 0 : index
    %0 = vector.load %arg1[%c0, %c0_0] : memref<8x128xf32, #tpu.memory_space<vmem>>, vector<8x128xf32>
    %c0_1 = arith.constant 0 : index
    %c0_2 = arith.constant 0 : index
    %1 = vector.load %arg2[%c0_1, %c0_2] : memref<8x128xf32, #tpu.memory_space<vmem>>, vector<8x128xf32>
    %2 = arith.subf %0, %1 : vector<8x128xf32>
    %3 = arith.mulf %2, %2 : vector<8x128xf32>
    %4 = vector.shape_cast %3 : vector<8x128xf32> to vector<1x8x128xf32>
    %cst = arith.constant dense<0.000000e+00> : vector<1xf32>
    %5 = vector.multi_reduction <add>, %4, %cst [1, 2] : vector<1x8x128xf32> to vector<1xf32>
    %6 = vector.shape_cast %5 : vector<1xf32> to vector<1x1x1xf32>
    %7 = vector.extract %6[0, 0, 0] : f32 from vector<1x1x1xf32>
    %8 = vector.broadcast %7 : f32 to vector<1x1xf32>
    %cst_3 = arith.constant 1.250000e-02 : f32
    %9 = vector.broadcast %cst_3 : f32 to vector<1x1xf32>
    %10 = arith.mulf %8, %9 : vector<1x1xf32>
    %c0_4 = arith.constant 0 : index
    %c0_5 = arith.constant 0 : index
    %11 = vector.load %arg3[%c0_4, %c0_5] : memref<1x1xf32, #tpu.memory_space<vmem>>, vector<1x1xf32>
    tpu.vector_store %arg3[%c0_4, %c0_5], %10 {strides = array<i32>} : memref<1x1xf32, #tpu.memory_space<vmem>>, vector<1x1xf32>,
    return
  }
  func.func @transform_0(%arg0: i32) -> (i32, i32) {
    %c0_i32 = arith.constant 0 : i32
    %c0_i32_0 = arith.constant 0 : i32
    %c0_i32_1 = arith.constant 0 : i32
    return %c0_i32, %c0_i32_0 : i32, i32
  }
  func.func @transform_1(%arg0: i32) -> (i32, i32) {
    %c0_i32 = arith.constant 0 : i32
    %c0_i32_0 = arith.constant 0 : i32
    %c0_i32_1 = arith.constant 0 : i32
    return %c0_i32, %c0_i32_0 : i32, i32
  }
  func.func @transform_2(%arg0: i32) -> (i32, i32) {
    %c0_i32 = arith.constant 0 : i32
    %c0_i32_0 = arith.constant 0 : i32
    %c0_i32_1 = arith.constant 0 : i32
    return %c0_i32, %c0_i32_0 : i32, i32
  }
}

</mosaic_0001>

<bundles_post_ra>
// kernel: tpu_custom_call.1
= control target key start
LH: loop header
LB: loop body
LE: loop exit
PB: predicated region body
PF: predicated region fallthrough
CT: control target
= control target key end

     0   :  { %7 = vsyncpa [#allocation3], 0  ;;  %s185_s0 = inlined_call_operand.hbm [shape: f32[8,128], index: 0, kind: input, shape index: {}]   ;;  %s186_s1 = inlined_call_operand.hbm [shape: f32[8,128], index: 1, kind: input, shape index: {}]   ;;  %s187_s2 = inlined_call_operand.hbm [shape: f32[1,1], index: 2, kind: output, shape index: {}]  }
   0x1   :  { %8 = vsyncpa [#allocation6], 0 }
   0x2   :  { %9 = vsyncpa [#allocation4], 0  ;;  %s15_s11 = sshll.u32 %s185_s0, 4  ;;  %s158_s12 = smov [#allocation2]   ;;  %s16_s11 = int_to_ptr.hbm [resolvable:$true] %s15_s11 }
   0x3   :  { %s17_s13 = sshll.u32 %s158_s12, 4  ;;  %s26_s16 = sshll.u32 %s186_s1, 4  ;;  %s18_s13 = int_to_ptr.vmem [resolvable:$true] %s17_s13  ;;  %s27_s16 = int_to_ptr.hbm [resolvable:$true] %s26_s16 }
   0x4   :  { %20 = dma.hbm_to_vmem [thread:$0]  %s16_s11, 128, %s18_s13, [#allocation3]  }
   0x5   :  { %s159_s17 = smov [#allocation5]  }
   0x6   :  { %s28_s18 = sshll.u32 %s159_s17, 4  ;;  %s29_s18 = int_to_ptr.vmem [resolvable:$true] %s28_s18 }
   0x7   :  { %31 = dma.hbm_to_vmem [thread:$0]  %s27_s16, 128, %s29_s18, [#allocation6]  }
   0x8   :  { %152 = dma.done.wait [#allocation3], 128  }
   0x9   :  { %153 = vsyncadd [#allocation3], 4294967168 }
   0xa   :  { %154 = dma.done.wait [#allocation6], 128  }
   0xb   :  { %155 = vsyncadd [#allocation6], 4294967168  ;;  %v40_v0 = vld [vmem:[#allocation2] sm:$0xff]  ;;  %v41_v1 = vld [vmem:[#allocation5] sm:$0xff]  ;;  %s160_s0 = smov [#allocation7]   ;;  %s64_s21 = sshll.u32 %s187_s2, 4  ;;  %s65_s21 = int_to_ptr.hbm [resolvable:$true] %s64_s21 }
   0xc   :  { %v42_v2 = vsub.f32 %v40_v0, %v41_v1  ;;  %s62_s1 = sshll.u32 %s160_s0, 4  ;;  %vm55_vm0 = vcmask 0   ;;  %s63_s1 = int_to_ptr.vmem [resolvable:$true] %s62_s1 }
   0xe   :  { %v43_v3 = vmul.f32 %v42_v2, %v42_v2 }
  0x10   :  { %44 = vadd.xlane.f32.xlu0 %v43_v3 }
  0x83   :  { %v45_v4 = vpop.xlane.xlu0 %44 }
  0x84   :  { %v46_v5 = vrot.slane %v45_v4, 4 }
  0x86   :  { %v47_v6 = vadd.f32 %v46_v5, %v45_v4 }
  0x88   :  { %v48_v7 = vrot.slane %v47_v6, 2 }
  0x8a   :  { %v49_v8 = vadd.f32 %v48_v7, %v47_v6 }
  0x8c   :  { %v50_v9 = vrot.slane %v49_v8, 1 }
  0x8e   :  { %v51_v10 = vadd.f32 %v50_v9, %v49_v8 }
  0x90   :  { %75 = vpush %v51_v10 }
  0xc1   :  { %s76_s22 = spop %75 }
  0xc2   :  { %v53_v11 = vstv %s76_s22 }
  0xc3   :  { %v54_v12 = vmul.f32 0.0125, %v53_v11 }
  0xc5   :  { %56 = vst.msk [vmem:[#allocation7] sm:$0x1] %vm55_vm0, %v54_v12 }
  0xc6   :  { %67 = dma.vmem_to_hbm [thread:$0]  %s63_s1, 16, %s65_s21, [#allocation4]  }
  0xc7   :  { %156 = dma.done.wait [#allocation4], 16  }
  0xc8   :  { %157 = vsyncadd [#allocation4], 4294967280 }
  0xc9   :  { %72 = vsyncpa [#allocation3], 1 }
  0xca   :  { %73 = vsyncpa [#allocation6], 1 }
  0xcb   :  { %74 = vsyncpa [#allocation4], 1 }

</bundles_post_ra>
